<compile_context>
chip_gen: v5e
topology: v5e:2x2
jax: 0.10.0
libtpu: 0.0.40
codegen_flags: <defaults>
</compile_context>

<pallas_src>
import functools

import jax
import jax.numpy as jnp
from jax.experimental import pallas as pl
from jax.experimental.pallas import tpu as pltpu

_LANES = 512                     # lane (last) slab dim; multiple of 128
_SLAB = 8 * _LANES               # 4096 elems = one full (8,128)-vreg slab row-group
_TILE_ROWS = 1024                # 1024x512 block: 2 MiB f32 / 1 MiB bf16 per stream
_VMEM_LIMIT = 32 * 1024 * 1024   # explicit scoped-VMEM budget (v5e default is 16 MiB)
_PALLAS_MIN_ELEMS = 1 << 20      # below ~1M elems, launch/plumbing overhead dominates


def _round_up(x, m):
    return ((x + m - 1) // m) * m


def _ssl_loss_kernel(sup_ref, unsup_ref, out_ref, *, lam):
    # Elementwise: out = sup + lambda_u * unsup.
    # Compute in f32 in-register, store back in the I/O dtype (bf16 stays bf16).
    s = sup_ref[...].astype(jnp.float32)
    u = unsup_ref[...].astype(jnp.float32)
    out_ref[...] = (s + jnp.float32(lam) * u).astype(out_ref.dtype)


def semi_supervised_loss(sup_loss, unsup_loss, lambda_u=1.0, *, force_pallas=False):
    """Pallas equivalent of Semi_Supervised_Loss.forward(sup_loss, unsup_loss).

    lambda_u is a static Python float (module hyperparameter) and is baked into
    the kernel as a compile-time constant.
    """
    sup = jnp.asarray(sup_loss)
    unsup = jnp.asarray(unsup_loss)
    lam = float(lambda_u)
    out_dtype = jnp.result_type(sup.dtype, unsup.dtype)

    # Broadcasting / non-float dtypes: let XLA fuse it (no HBM-materialized
    # broadcast copies just to feed a kernel).
    if sup.shape != unsup.shape or not jnp.issubdtype(out_dtype, jnp.floating):
        return sup + lam * unsup

    orig_shape = sup.shape
    n = int(sup.size)

    # Tiny / scalar losses (the typical use of this module): a Pallas launch is
    # pure overhead for 2 flops/elem.
    if n == 0 or (n < _PALLAS_MIN_ELEMS and not force_pallas):
        return sup + lam * unsup

    needs_pad = (n % _SLAB) != 0
    if needs_pad and not force_pallas:
        # jnp.pad + trailing slice are each a full extra HBM pass over a tensor
        # whose kernel is purely bandwidth bound -> fused XLA wins on this path.
        return sup + lam * unsup

    flat_sup = sup.astype(out_dtype).reshape(-1)
    flat_unsup = unsup.astype(out_dtype).reshape(-1)
    n_pad = _round_up(n, _SLAB) if needs_pad else n
    if needs_pad:
        # Test-only path (force_pallas=True): pad the tail to a full vreg slab.
        flat_sup = jnp.pad(flat_sup, (0, n_pad - n))
        flat_unsup = jnp.pad(flat_unsup, (0, n_pad - n))

    rows = n_pad // _LANES                      # multiple of 8 by construction
    tile_rows = min(_TILE_ROWS, rows)           # still a multiple of 8
    grid = pl.cdiv(rows, tile_rows)             # partial last block handled by Pallas

    sup2d = flat_sup.reshape(rows, _LANES)
    unsup2d = flat_unsup.reshape(rows, _LANES)

    tile_spec = pl.BlockSpec((tile_rows, _LANES), lambda i: (i, 0))
    itemsize = jnp.dtype(out_dtype).itemsize

    # TODO(synk): on v7x, verify in xprof that ("parallel",) actually shards the
    # grid across both TensorCores; if not, switch to pltpu.CORE_PARALLEL.
    out2d = pl.pallas_call(
        functools.partial(_ssl_loss_kernel, lam=lam),
        out_shape=jax.ShapeDtypeStruct((rows, _LANES), out_dtype),
        grid_spec=pl.GridSpec(
            grid=(grid,),
            in_specs=[tile_spec, tile_spec],
            out_specs=tile_spec,
        ),
        compiler_params=pltpu.CompilerParams(
            dimension_semantics=("parallel",),
            vmem_limit_bytes=_VMEM_LIMIT,
        ),
        cost_estimate=pl.CostEstimate(
            flops=2 * n_pad,
            transcendentals=0,
            bytes_accessed=3 * itemsize * n_pad,
        ),
    )(sup2d, unsup2d)

    out_flat = out2d.reshape(-1)
    if needs_pad:
        out_flat = out_flat[:n]
    return out_flat.reshape(orig_shape)


class SemiSupervisedLoss:
    """Thin stateful wrapper mirroring the PyTorch nn.Module."""

    def __init__(self, lambda_u=1.0):
        self.lambda_u = float(lambda_u)

    def __call__(self, sup_loss, unsup_loss, **kw):
        return semi_supervised_loss(sup_loss, unsup_loss, self.lambda_u, **kw)


if __name__ == "__main__":
    key = jax.random.PRNGKey(0)
    ks = jax.random.split(key, 10)

    # 1) Typical usage: scalar sup/unsup losses -> fused-XLA fast path.
    sup_s = jax.random.uniform(ks[0], (), dtype=jnp.float32)
    unsup_s = jax.random.uniform(ks[1], (), dtype=jnp.float32)
    out_s = jax.block_until_ready(semi_supervised_loss(sup_s, unsup_s, 1.0))
    assert jnp.allclose(out_s, sup_s + 1.0 * unsup_s, rtol=1e-6, atol=1e-6)

    # 2) Small aligned f32 tensor forced through the kernel (single block).
    sup_a = jax.random.uniform(ks[2], (8, 512), dtype=jnp.float32)
    unsup_a = jax.random.uniform(ks[3], (8, 512), dtype=jnp.float32)
    out_a = jax.block_until_ready(
        semi_supervised_loss(sup_a, unsup_a, 0.5, force_pallas=True))
    assert out_a.dtype == jnp.float32
    assert jnp.allclose(out_a, sup_a + 0.5 * unsup_a, rtol=1e-6, atol=1e-6)

    # 3) bf16 inputs stay bf16 end-to-end (no forced f32 cast copies).
    sup_b = jax.random.uniform(ks[4], (32, 512), dtype=jnp.float32).astype(jnp.bfloat16)
    unsup_b = jax.random.uniform(ks[5], (32, 512), dtype=jnp.float32).astype(jnp.bfloat16)
    loss_mod = SemiSupervisedLoss(lambda_u=2.0)
    out_b = jax.block_until_ready(loss_mod(sup_b, unsup_b, force_pallas=True))
    assert out_b.dtype == jnp.bfloat16
    ref_b = (sup_b.astype(jnp.float32) + 2.0 * unsup_b.astype(jnp.float32)).astype(jnp.bfloat16)
    assert jnp.allclose(out_b.astype(jnp.float32), ref_b.astype(jnp.float32),
                        rtol=2e-2, atol=2e-2)

    # 4) Multi-block grid with a partial (masked) last block via pl.cdiv.
    sup_c = jax.random.uniform(ks[6], (1200, 512), dtype=jnp.float32)
    unsup_c = jax.random.uniform(ks[7], (1200, 512), dtype=jnp.float32)
    out_c = jax.block_until_ready(
        semi_supervised_loss(sup_c, unsup_c, 0.25, force_pallas=True))
    assert jnp.allclose(out_c, sup_c + 0.25 * unsup_c, rtol=1e-6, atol=1e-6)

    # 5) Ragged shape forced through the kernel (pad + slice test-only path);
    #    the production path for ragged shapes is the fused-XLA fallback.
    sup_r = jax.random.uniform(ks[8], (7, 300), dtype=jnp.float32)
    unsup_r = jax.random.uniform(ks[9], (7, 300), dtype=jnp.float32)
    out_r = jax.block_until_ready(
        semi_supervised_loss(sup_r, unsup_r, 3.0, force_pallas=True))
    assert jnp.allclose(out_r, sup_r + 3.0 * unsup_r, rtol=1e-6, atol=1e-6)

    # 6) Broadcast case (tensor sup + scalar unsup) stays in fused XLA.
    out_bc = jax.block_until_ready(semi_supervised_loss(sup_a, unsup_s, 2.0))
    assert jnp.allclose(out_bc, sup_a + 2.0 * unsup_s, rtol=1e-6, atol=1e-6)

    print("KERNEL_OK")
</pallas_src>

<mosaic_0001>
module attributes {stable_mosaic.version = 11 : i64} {
  func.func @_ssl_loss_kernel(%arg0: i32, %arg1: memref<8x512xf32, #tpu.memory_space<vmem>>, %arg2: memref<8x512xf32, #tpu.memory_space<vmem>>, %arg3: memref<8x512xf32, #tpu.memory_space<vmem>>) attributes {dimension_semantics = [#tpu.dimension_semantics<parallel>], iteration_bounds = array<i64: 1>, scalar_prefetch = 0 : i64, scratch_operands = 0 : i64, tpu.core_type = #tpu.core_type<tc>, window_params = [{transform_indices = @transform_0, window_bounds = array<i64: 8, 512>}, {transform_indices = @transform_1, window_bounds = array<i64: 8, 512>}, {transform_indices = @transform_2, window_bounds = array<i64: 8, 512>}]} {
    %c0 = arith.constant 0 : index
    %c0_0 = arith.constant 0 : index
    %0 = vector.load %arg1[%c0, %c0_0] : memref<8x512xf32, #tpu.memory_space<vmem>>, vector<8x512xf32>
    %c0_1 = arith.constant 0 : index
    %c0_2 = arith.constant 0 : index
    %1 = vector.load %arg2[%c0_1, %c0_2] : memref<8x512xf32, #tpu.memory_space<vmem>>, vector<8x512xf32>
    %cst = arith.constant 5.000000e-01 : f32
    %2 = vector.broadcast %cst : f32 to vector<8x512xf32>
    %3 = arith.mulf %2, %1 : vector<8x512xf32>
    %4 = arith.addf %0, %3 : vector<8x512xf32>
    %c0_3 = arith.constant 0 : index
    %c0_4 = arith.constant 0 : index
    %5 = vector.load %arg3[%c0_3, %c0_4] : memref<8x512xf32, #tpu.memory_space<vmem>>, vector<8x512xf32>
    tpu.vector_store %arg3[%c0_3, %c0_4], %4 {strides = array<i32>} : memref<8x512xf32, #tpu.memory_space<vmem>>, vector<8x512xf32>,
    return
  }
  func.func @transform_0(%arg0: i32) -> (i32, i32) {
    %c0_i32 = arith.constant 0 : i32
    %c0_i32_0 = arith.constant 0 : i32
    return %arg0, %c0_i32 : i32, i32
  }
  func.func @transform_1(%arg0: i32) -> (i32, i32) {
    %c0_i32 = arith.constant 0 : i32
    %c0_i32_0 = arith.constant 0 : i32
    return %arg0, %c0_i32 : i32, i32
  }
  func.func @transform_2(%arg0: i32) -> (i32, i32) {
    %c0_i32 = arith.constant 0 : i32
    %c0_i32_0 = arith.constant 0 : i32
    return %arg0, %c0_i32 : i32, i32
  }
}

</mosaic_0001>

<bundles_post_ra>
// kernel: tpu_custom_call.1
= control target key start
LH: loop header
LB: loop body
LE: loop exit
PB: predicated region body
PF: predicated region fallthrough
CT: control target
= control target key end

     0   :  { %7 = vsyncpa [#allocation3], 0  ;;  %s186_s0 = inlined_call_operand.hbm [shape: f32[8,512], index: 0, kind: input, shape index: {}]   ;;  %s187_s1 = inlined_call_operand.hbm [shape: f32[8,512], index: 1, kind: input, shape index: {}]   ;;  %s188_s2 = inlined_call_operand.hbm [shape: f32[8,512], index: 2, kind: output, shape index: {}]  }
   0x1   :  { %8 = vsyncpa [#allocation6], 0 }
   0x2   :  { %9 = vsyncpa [#allocation4], 0  ;;  %s15_s11 = sshll.u32 %s186_s0, 4  ;;  %s159_s12 = smov [#allocation2]   ;;  %s16_s11 = int_to_ptr.hbm [resolvable:$true] %s15_s11 }
   0x3   :  { %s17_s13 = sshll.u32 %s159_s12, 4  ;;  %s26_s16 = sshll.u32 %s187_s1, 4  ;;  %s18_s13 = int_to_ptr.vmem [resolvable:$true] %s17_s13  ;;  %s27_s16 = int_to_ptr.hbm [resolvable:$true] %s26_s16 }
   0x4   :  { %20 = dma.hbm_to_vmem [thread:$0]  %s16_s11, 512, %s18_s13, [#allocation3]  }
   0x5   :  { %s160_s17 = smov [#allocation5]  }
   0x6   :  { %s28_s18 = sshll.u32 %s160_s17, 4  ;;  %s29_s18 = int_to_ptr.vmem [resolvable:$true] %s28_s18 }
   0x7   :  { %31 = dma.hbm_to_vmem [thread:$0]  %s27_s16, 512, %s29_s18, [#allocation6]  }
   0x8   :  { %153 = dma.done.wait [#allocation3], 512  }
   0x9   :  { %154 = vsyncadd [#allocation3], 4294966784 }
   0xa   :  { %155 = dma.done.wait [#allocation6], 512  }
   0xb   :  { %156 = vsyncadd [#allocation6], 4294966784  ;;  %v40_v0 = vld [vmem:[#allocation2] sm:$0xff]  ;;  %v41_v2 = vld [vmem:[#allocation2 + $0x8] sm:$0xff]  ;;  %s161_s0 = smov [#allocation7]   ;;  %s67_s21 = sshll.u32 %s188_s2, 4  ;;  %s68_s21 = int_to_ptr.hbm [resolvable:$true] %s67_s21 }
   0xc   :  { %v44_v1 = vld [vmem:[#allocation5] sm:$0xff]  ;;  %v45_v4 = vld [vmem:[#allocation5 + $0x8] sm:$0xff]  ;;  %v42_v5 = vld [vmem:[#allocation2 + $0x10] sm:$0xff]  ;;  %s65_s1 = sshll.u32 %s161_s0, 4  ;;  %s66_s1 = int_to_ptr.vmem [resolvable:$true] %s65_s1 }
   0xd   :  { %v48_v3 = vmul.f32 0.5, %v44_v1  ;;  %v46_v6 = vld [vmem:[#allocation5 + $0x10] sm:$0xff]  ;;  %v49_v7 = vmul.f32 0.5, %v45_v4  ;;  %v43_v9 = vld [vmem:[#allocation2 + $0x18] sm:$0xff] }
   0xe   :  { %v50_v8 = vmul.f32 0.5, %v46_v6  ;;  %v47_v10 = vld [vmem:[#allocation5 + $0x18] sm:$0xff] }
   0xf   :  { %v52_v11 = vadd.f32 %v48_v3, %v40_v0  ;;  %v51_v12 = vmul.f32 0.5, %v47_v10  ;;  %v53_v13 = vadd.f32 %v49_v7, %v41_v2 }
  0x10   :  { %v54_v14 = vadd.f32 %v50_v8, %v42_v5 }
  0x11   :  { %56 = vst [vmem:[#allocation7] sm:$0xff] %v52_v11  ;;  %v55_v15 = vadd.f32 %v51_v12, %v43_v9 }
  0x12   :  { %57 = vst [vmem:[#allocation7 + $0x8] sm:$0xff] %v53_v13 }
  0x13   :  { %58 = vst [vmem:[#allocation7 + $0x10] sm:$0xff] %v54_v14 }
  0x14   :  { %59 = vst [vmem:[#allocation7 + $0x18] sm:$0xff] %v55_v15 }
  0x15   :  { %70 = dma.vmem_to_hbm [thread:$0]  %s66_s1, 512, %s68_s21, [#allocation4]  }
  0x16   :  { %157 = dma.done.wait [#allocation4], 512  }
  0x17   :  { %158 = vsyncadd [#allocation4], 4294966784 }
  0x18   :  { %75 = vsyncpa [#allocation3], 1 }
  0x19   :  { %76 = vsyncpa [#allocation6], 1 }
  0x1a   :  { %77 = vsyncpa [#allocation4], 1 }

</bundles_post_ra>
